<compile_context>
chip_gen: v6e
topology: v6e:2x2x1
jax: 0.10.0
libtpu: 0.0.40
codegen_flags: <defaults>
</compile_context>

<pallas_src>
import functools

import jax
import jax.numpy as jnp
from jax import lax
from jax.experimental import pallas as pl
from jax.experimental.pallas import tpu as pltpu

_MIB = 1024 * 1024


def _round_up(x: int, m: int) -> int:
    return ((x + m - 1) // m) * m


def _large_vmem_device() -> bool:
    """True on TPU generations with 128 MiB VMEM per core (v4 / v5 / v6)."""
    try:
        kind = jax.devices()[0].device_kind.lower()
    except Exception:
        return False
    return ("v4" in kind) or ("v5" in kind) or ("v6" in kind)


# --------------------------------- kernels ---------------------------------

def _matvec_ktiled_kernel(a_ref, b_ref, o_ref, *, tk: int, k_total: int,
                          ragged_k: bool):
    """Grid = (M tiles, K tiles); K is the innermost (reduction) axis.

    a_ref: (tm, tk)  tile of A   (lane-dense streaming slab)
    b_ref: (1, tk)   tile of B   (lane-dense, tiny, contiguous DMA)
    o_ref: (tm, 1)   f32 output block, resident across the K sweep (accumulator)
    """
    k = pl.program_id(1)

    @pl.when(k == 0)
    def _init():
        o_ref[...] = jnp.zeros_like(o_ref)

    prod = a_ref[...] * b_ref[...]                       # (tm, tk), VPU only
    if ragged_k:
        # Mask out-of-range K columns of the (padded) last K tile.
        col = lax.broadcasted_iota(jnp.int32, (1, tk), 1) + k * tk
        prod = jnp.where(col < k_total, prod, 0.0)
    o_ref[...] += jnp.sum(prod, axis=1, keepdims=True)   # (tm, 1) f32


def _matvec_fullk_kernel(a_ref, b_ref, o_ref):
    """Single-K-block path: a_ref (tm, K), b_ref (1, K), o_ref (tm, 1)."""
    o_ref[...] = jnp.sum(a_ref[...] * b_ref[...], axis=1, keepdims=True)


# --------------------------------- wrapper ---------------------------------

def matvecmul(A: jax.Array, B: jax.Array, *, tm: int = 256,
              tile_bytes: int | None = None) -> jax.Array:
    """A @ B -> (M, 1), identical to the CUDA matvecmul kernel."""
    M, K = A.shape
    A = A.astype(jnp.float32)
    bv = jnp.asarray(B, dtype=jnp.float32).reshape(K)

    large_vmem = _large_vmem_device()
    if tile_bytes is None:
        tile_bytes = (16 if large_vmem else 8) * _MIB
    vmem_cap = (112 if large_vmem else 56) * _MIB

    # Row tile: multiple of 8 (or full M).  Guarantee >= 2 row slabs when M
    # allows so the "parallel" M axis shards across TensorCores (v7x megacore).
    tm_eff = min(tm, M)
    if M >= 16 and -(-M // tm_eff) < 2:
        tm_eff = _round_up(-(-M // 2), 8)

    k_aligned = (K % 128) == 0
    tk_target = max(128, ((tile_bytes // (tm_eff * 4)) // 128) * 128)
    use_ktiled = k_aligned and K > tk_target

    if use_ktiled:
        tk = tk_target
        grid_k = -(-K // tk)
        k_pad = grid_k * tk
        ragged_k = k_pad != K
        grid_m = -(-M // tm_eff)
        # Zero-pad B (tiny) so its (1, tk) blocks are never ragged / undefined.
        b2d = jnp.pad(bv, (0, k_pad - K)).reshape(1, k_pad)

        kernel = functools.partial(_matvec_ktiled_kernel, tk=tk, k_total=K,
                                   ragged_k=ragged_k)
        per_buf = tm_eff * tk * 4
        vmem_limit = min(vmem_cap, 3 * per_buf + 2 * tk * 4 + 16 * _MIB)
        return pl.pallas_call(
            kernel,
            out_shape=jax.ShapeDtypeStruct((M, 1), jnp.float32),
            grid_spec=pltpu.PrefetchScalarGridSpec(
                num_scalar_prefetch=0,
                grid=(grid_m, grid_k),
                in_specs=[
                    # A row-slab, K-tiled: rows stream with i, columns with k.
                    pl.BlockSpec((tm_eff, tk), lambda i, k: (i, k)),
                    # B lane-dense K tile (tk*4 bytes, contiguous; negligible
                    # next to the A slab DMA).
                    pl.BlockSpec((1, tk), lambda i, k: (0, k)),
                ],
                # Same output block across the K sweep -> resident accumulator.
                out_specs=pl.BlockSpec((tm_eff, 1), lambda i, k: (i, 0)),
            ),
            compiler_params=pltpu.CompilerParams(
                dimension_semantics=("parallel", "arbitrary"),
                vmem_limit_bytes=int(vmem_limit),
            ),
        )(A, b2d)

    # ---- Single full-K block path (small K, or K not 128-aligned). ----
    if tm_eff * K * 4 > tile_bytes:
        # Shrink the row slab so a full-K block stays within the tile budget.
        tm_fb = max(8, (tile_bytes // (K * 4)) // 8 * 8)
        tm_eff = min(tm_eff, tm_fb)
        # TODO(synk): extreme non-128-aligned K (8*K*4 beyond the VMEM budget)
        # would need K tiling with element-level masking; not implemented.
    grid_m = -(-M // tm_eff)
    per_buf = tm_eff * K * 4
    vmem_limit = min(vmem_cap, 3 * per_buf + 2 * _round_up(K, 128) * 4 + 16 * _MIB)
    return pl.pallas_call(
        _matvec_fullk_kernel,
        out_shape=jax.ShapeDtypeStruct((M, 1), jnp.float32),
        grid_spec=pltpu.PrefetchScalarGridSpec(
            num_scalar_prefetch=0,
            grid=(grid_m,),
            in_specs=[
                pl.BlockSpec((tm_eff, K), lambda i: (i, 0)),
                # Whole B resident, lane-dense (1, K); DMAed once.
                pl.BlockSpec((1, K), lambda i: (0, 0)),
            ],
            out_specs=pl.BlockSpec((tm_eff, 1), lambda i: (i, 0)),
        ),
        compiler_params=pltpu.CompilerParams(
            dimension_semantics=("parallel",),
            vmem_limit_bytes=int(vmem_limit),
        ),
    )(A, bv.reshape(1, K))


if __name__ == "__main__":
    key = jax.random.PRNGKey(0)
    k1, k2, k3, k4, k5, k6 = jax.random.split(key, 6)

    # 1) Small aligned case (shapes consistent with the module's forward).
    M, K = 256, 128
    A = jax.random.normal(k1, (M, K), dtype=jnp.float32)
    B = jax.random.normal(k2, (K,), dtype=jnp.float32)
    out = matvecmul(A, B)
    jax.block_until_ready(out)
    ref = (A @ B).reshape(M, 1)
    assert out.shape == (M, 1)
    assert jnp.allclose(out, ref, atol=1e-3, rtol=1e-4)

    # 2) Ragged M + non-128-aligned K (full-K fallback path), B given as (K, 1).
    M2, K2 = 260, 160
    A2 = jax.random.normal(k3, (M2, K2), dtype=jnp.float32)
    B2 = jax.random.normal(k4, (K2, 1), dtype=jnp.float32)
    out2 = matvecmul(A2, B2)
    jax.block_until_ready(out2)
    ref2 = A2 @ B2
    assert out2.shape == (M2, 1)
    assert jnp.allclose(out2, ref2, atol=1e-3, rtol=1e-4)

    # 3) K-tiled streaming path with a ragged last K tile (forced small tiles).
    M3, K3 = 48, 1408  # 11 * 128, not a multiple of the 256-wide K tile below
    A3 = jax.random.normal(k5, (M3, K3), dtype=jnp.float32)
    B3 = jax.random.normal(k6, (K3,), dtype=jnp.float32)
    out3 = matvecmul(A3, B3, tm=32, tile_bytes=32 * 1024)
    jax.block_until_ready(out3)
    ref3 = (A3 @ B3).reshape(M3, 1)
    assert out3.shape == (M3, 1)
    assert jnp.allclose(out3, ref3, atol=1e-3, rtol=1e-4)

    print("KERNEL_OK")
</pallas_src>

<mosaic_0001>
module attributes {stable_mosaic.version = 11 : i64} {
  func.func @_matvec_fullk_kernel(%arg0: i32, %arg1: memref<128x128xf32, #tpu.memory_space<vmem>>, %arg2: memref<1x128xf32, #tpu.memory_space<vmem>>, %arg3: memref<128x1xf32, #tpu.memory_space<vmem>>) attributes {dimension_semantics = [#tpu.dimension_semantics<parallel>], iteration_bounds = array<i64: 2>, scalar_prefetch = 0 : i64, scratch_operands = 0 : i64, tpu.core_type = #tpu.core_type<tc>, window_params = [{transform_indices = @transform_0, window_bounds = array<i64: 128, 128>}, {pipeline_mode = #tpu.pipeline_mode<synchronous>, transform_indices = @transform_1, window_bounds = array<i64: 1, 128>}, {transform_indices = @transform_2, window_bounds = array<i64: 128, 1>}]} {
    %c0 = arith.constant 0 : index
    %c0_0 = arith.constant 0 : index
    %0 = vector.load %arg1[%c0, %c0_0] : memref<128x128xf32, #tpu.memory_space<vmem>>, vector<128x128xf32>
    %c0_1 = arith.constant 0 : index
    %c0_2 = arith.constant 0 : index
    %1 = vector.load %arg2[%c0_1, %c0_2] : memref<1x128xf32, #tpu.memory_space<vmem>>, vector<1x128xf32>
    %2 = vector.broadcast %1 : vector<1x128xf32> to vector<128x128xf32>
    %3 = arith.mulf %0, %2 : vector<128x128xf32>
    %cst = arith.constant dense<0.000000e+00> : vector<128xf32>
    %4 = vector.multi_reduction <add>, %3, %cst [1] : vector<128x128xf32> to vector<128xf32>
    %5 = vector.shape_cast %4 : vector<128xf32> to vector<128x1xf32>
    %c0_3 = arith.constant 0 : index
    %c0_4 = arith.constant 0 : index
    %6 = vector.load %arg3[%c0_3, %c0_4] : memref<128x1xf32, #tpu.memory_space<vmem>>, vector<128x1xf32>
    tpu.vector_store %arg3[%c0_3, %c0_4], %5 {strides = array<i32>} : memref<128x1xf32, #tpu.memory_space<vmem>>, vector<128x1xf32>,
    return
  }
  func.func @transform_0(%arg0: i32) -> (i32, i32) {
    %c0_i32 = arith.constant 0 : i32
    %c0_i32_0 = arith.constant 0 : i32
    return %arg0, %c0_i32 : i32, i32
  }
  func.func @transform_1(%arg0: i32) -> (i32, i32) {
    %c0_i32 = arith.constant 0 : i32
    %c0_i32_0 = arith.constant 0 : i32
    %c0_i32_1 = arith.constant 0 : i32
    return %c0_i32, %c0_i32_0 : i32, i32
  }
  func.func @transform_2(%arg0: i32) -> (i32, i32) {
    %c0_i32 = arith.constant 0 : i32
    %c0_i32_0 = arith.constant 0 : i32
    return %arg0, %c0_i32 : i32, i32
  }
}

</mosaic_0001>

<bundles_post_ra>
// kernel: tpu_custom_call.1
= control target key start
LH: loop header
LB: loop body
LE: loop exit
PB: predicated region body
PF: predicated region fallthrough
CT: control target
= control target key end

     0   :  { %7 = vsyncpa [#allocation3], 0  ;;  %s614_s0 = inlined_call_operand.hbm [shape: f32[256,128], index: 0, kind: input, shape index: {}]   ;;  %s615_s1 = inlined_call_operand.vmem [shape: f32[1,128], index: 1, kind: input, shape index: {}]   ;;  %s616_s2 = inlined_call_operand.vmem [shape: f32[256,1], index: 2, kind: output, shape index: {}]  }
   0x1   :  { %9 = vsyncpa [#allocation3 + $0x1], 0  ;;  %s459_s9 = smov 0   ;;  %s461_s10 = smov 0  }
   0x2   :  { %s463_s11 = smov 0   ;;  %s465_s12 = smov 0  }
   0x3 LB: > { %s321_s13 = sadd.s32 4294967295, %s439_s12   ;;  %s479_s14 = sadd.s32 1, %s439_s12   ;;  %s439_s12 = sphi %s465_s12, %s625_s12   ;;  %s435_s11 = sphi %s463_s11, %s624_s11   ;;  %s431_s10 = sphi %s461_s10, %s623_s10   ;;  %s427_s9 = sphi %s459_s9, %s622_s9  }
   0x4   : > { %s19_s15 = ssub.s32 %s439_s12, %s479_s14  ;;  %s22_s16 = sadd.s32 1, %s435_s11 }
   0x5   : > { %p20_p0 = scmp.eq.s32.totalorder %s19_s15, 0  ;;  %p29_p1 = scmp.ne.s32.totalorder %s435_s11, %s431_s10 }
   0x6   : > { %p30_p2 = scmp.eq.s32.totalorder %s439_s12, 0  ;;  %p35_p3 = scmp.ne.s32.totalorder %s431_s10, %s427_s9 }
   0x7   : > { %s489_s17 = scalar_select %p20_p0, %s435_s11, %s22_s16  }
   0x8   : > { %p31_p4 = por %p30_p2, %p29_p1  ;;  %p36_p5 = scmp.eq.s32.totalorder %s321_s13, 0 }
   0x9   : > { %p342_p6 = scmp.lt.s32.totalorder %s439_s12, 2  ;;  %s109_s19 = sand.u32 1, %s435_s11  }
   0xa   : > { %p494_p7 = por %p36_p5, %p35_p3  ;;  %s325_s20 = sshll.u32 %s109_s19, 7 }
   0xb   : > { %s335_s21 = sshll.u32 %s439_s12, 11  ;;  %s113_s25 = scalar_lea.vmem [#allocation2], %s325_s20 }
   0xc   : > { %s618_s18 = scalar_select %p494_p7, 1, 0 }
   0xd   : > { %s503_s24 = scalar_lea.hbm %s614_s0, %s335_s21  ;;  %s120_s26 = sshll.u32 %s113_s25, 4  ;;  %s505_s26 = int_to_ptr.vmem [resolvable:$true] %s120_s26 }
   0xe   : > { %p507_p8 = pnand %p342_p6, %p31_p4  ;;  %s512_s28 = scalar_lea.sflag [#allocation3], %s109_s19 }
   0xf   : > { %s377_s29 = scalar_lea.hbm %s503_s24, 2048  ;;  %s382_s4 = scalar_lea.hbm %s614_s0, 4096 }
  0x10   : > { %p378_p10 = scmp.ne.s32.totalorder %s503_s24, %s377_s29  ;;  %p379_p11 = pneg %p507_p8 }
  0x11   : > { %p383_p0 = scmp.lt.s32.totalorder %s503_s24, %s614_s0  ;;  %p384_p1 = scmp.lt.s32.totalorder %s382_s4, %s377_s29 }
  0x12   : > { %p380_p12 = pnand %p379_p11, %p378_p10 }
  0x13   : > { %p385_p2 = por %p384_p1, %p383_p0 }
  0x14   : > { %p381_p13 = pneg %p380_p12 }
  0x16   : > { %p386_p3 = pnand %p385_p2, %p381_p13 }
  0x18   : > { %389 = shalt.err (!%p386_p3)
}
  0x19   : > { %s390_s7 = scalar_lea.vmem %s505_s26, 2048  ;;  %s441_s8 = smov [#allocation2]  }
  0x1a   : > { %p391_p4 = scmp.ne.s32.totalorder %s505_s26, %s390_s7  ;;  %s395_s9 = sshll.u32 %s441_s8, 4  ;;  %s396_s9 = int_to_ptr.vmem [resolvable:$false] %s395_s9 }
  0x1b   : > { %s397_s15 = scalar_lea.vmem %s396_s9, 4096  ;;  %p398_p10 = scmp.lt.s32.totalorder %s505_s26, %s396_s9 }
  0x1c   : > { %p393_p5 = pnand %p391_p4, %p379_p11  ;;  %p399_p12 = scmp.lt.s32.totalorder %s397_s15, %s390_s7 }
  0x1e   : > { %p394_p6 = pneg %p393_p5  ;;  %p400_p9 = por %p399_p12, %p398_p10 }
  0x20   : > { %p401_p7 = pnand %p400_p9, %p394_p6 }
  0x22   : > { %404 = shalt.err (!%p401_p7)
}
  0x23   : > { %s442_s16 = smov 128   ;;  %s443_s19 = smov 8  }
  0x24   : > { %341 = dma.hbm_to_vmem [thread:$0]  (!%p507_p8), %s503_s24, 2048, %s505_s26, %s512_s28, %s442_s16, %s442_s16, %s443_s19  }
  0x25   : > { %p128_p11 = scmp.lt.s32.totalorder %s439_s12, 3  ;;  %p620_p13 = scmp.ge.s32.totalorder %s439_s12, 1 }
  0x27   : > { %p129_p0 = pnand %p620_p13, %p128_p11 }
  0x28   : > { %s134_s20 = sand.u32 (!%p129_p0), 1, %s431_s10   ;;  %p621_p7 = scmp.ne.s32.totalorder (!%p129_p0), %s618_s18, 0 }
  0x29   : > { %132 = sbr.rel (%p129_p0) target bundleno = 218 (0xda), region = 28  ;;  %s329_s21 = sshll.u32 (!%p129_p0), %s134_s20, 7 }
  0x2a   : > { %s135_s22 = scalar_lea.sflag (!%p129_p0), [#allocation3], %s134_s20  ;;  %s537_s23 = scalar_lea.vmem (!%p129_p0), [#allocation2], %s329_s21 }
  0x2e   : > { %422 = dma.done.wait (%p621_p7), %s135_s22, 2048  }
  0x2f   : > { %424 = vsyncadd (%p621_p7), %s135_s22, 4294965248  ;;  %v168_v0 = vld [vmem:[%s537_s23 + $0x10] sm:$0xff]  ;;  %v332_v1 = vld [vmem:[%s615_s1] ss:$0 sm:$0xff]  ;;  %s330_s18 = sshll.u32 %s321_s13, 4  ;;  %vm237_vm0 = vcmask 7168  }
  0x30   : > { %v166_v2 = vld [vmem:[%s537_s23] sm:$0xff]  ;;  %v191_v3 = vmul.f32 %v332_v1, %v168_v0  ;;  %v169_v5 = vld [vmem:[%s537_s23 + $0x18] sm:$0xff]  ;;  %v167_v6 = vld [vmem:[%s537_s23 + $0x8] sm:$0xff]  ;;  %p161_p8 = scmp.lt.s32.totalorder %s330_s18, 31 }
  0x31   : > { %v189_v4 = vmul.f32 %v332_v1, %v166_v2  ;;  %v192_v7 = vmul.f32 %v332_v1, %v169_v5  ;;  %v190_v8 = vmul.f32 %v332_v1, %v167_v6  ;;  %v171_v9 = vld [vmem:[%s537_s23 + $0x28] sm:$0xff]  ;;  %v170_v10 = vld [vmem:[%s537_s23 + $0x20] sm:$0xff]  ;;  %v173_v13 = vld [vmem:[%s537_s23 + $0x38] sm:$0xff] }
  0x32   : > { %209 = vadd.xlane.f32.xlu1 %v191_v3  ;;  %v194_v11 = vmul.f32 %v332_v1, %v171_v9  ;;  %v193_v12 = vmul.f32 %v332_v1, %v170_v10  ;;  %v172_v14 = vld [vmem:[%s537_s23 + $0x30] sm:$0xff]  ;;  %v196_v15 = vmul.f32 %v332_v1, %v173_v13  ;;  %v175_v17 = vld [vmem:[%s537_s23 + $0x48] sm:$0xff]  ;;  %v174_v18 = vld [vmem:[%s537_s23 + $0x40] sm:$0xff]  ;;  %s627_s18 = smov (!%p161_p8, %s330_s18), 31 }
  0x33   : > { %205 = vadd.xlane.f32.xlu0 %v189_v4  ;;  %v195_v16 = vmul.f32 %v332_v1, %v172_v14  ;;  %v198_v19 = vmul.f32 %v332_v1, %v175_v17  ;;  %v197_v20 = vmul.f32 %v332_v1, %v174_v18  ;;  %v177_v21 = vld [vmem:[%s537_s23 + $0x58] sm:$0xff]  ;;  %v176_v22 = vld [vmem:[%s537_s23 + $0x50] sm:$0xff]  ;;  %v179_v25 = vld [vmem:[%s537_s23 + $0x68] sm:$0xff]  ;;  %s331_s26 = sshll.u32 %s627_s18, 3 }
  0x34   : > { %v200_v23 = vmul.f32 %v332_v1, %v177_v21  ;;  %v199_v24 = vmul.f32 %v332_v1, %v176_v22  ;;  %v178_v26 = vld [vmem:[%s537_s23 + $0x60] sm:$0xff]  ;;  %v202_v27 = vmul.f32 %v332_v1, %v179_v25  ;;  %v181_v29 = vld [vmem:[%s537_s23 + $0x78] sm:$0xff]  ;;  %v180_v30 = vld [vmem:[%s537_s23 + $0x70] sm:$0xff]  ;;  %s567_s29 = scalar_lea.vmem %s616_s2, %s331_s26 }
  0x35   : > { %v201_v28 = vmul.f32 %v332_v1, %v178_v26  ;;  %v204_v31 = vmul.f32 %v332_v1, %v181_v29  ;;  %v203_v32 = vmul.f32 %v332_v1, %v180_v30 }
  0x36   : > { %211 = vadd.xlane.f32.xlu1 %v192_v7 }
  0x37   : > { %207 = vadd.xlane.f32.xlu0 %v190_v8 }
  0x3a   : > { %215 = vadd.xlane.f32.xlu1 %v194_v11 }
  0x3b   : > { %213 = vadd.xlane.f32.xlu0 %v193_v12 }
  0x3e   : > { %219 = vadd.xlane.f32.xlu1 %v196_v15 }
  0x3f   : > { %217 = vadd.xlane.f32.xlu0 %v195_v16 }
  0x42   : > { %223 = vadd.xlane.f32.xlu1 %v198_v19 }
  0x43   : > { %221 = vadd.xlane.f32.xlu0 %v197_v20 }
  0x46   : > { %227 = vadd.xlane.f32.xlu1 %v200_v23 }
  0x47   : > { %225 = vadd.xlane.f32.xlu0 %v199_v24 }
  0x4a   : > { %231 = vadd.xlane.f32.xlu1 %v202_v27 }
  0x4b   : > { %229 = vadd.xlane.f32.xlu0 %v201_v28 }
  0x4e   : > { %235 = vadd.xlane.f32.xlu1 %v204_v31 }
  0x4f   : > { %233 = vadd.xlane.f32.xlu0 %v203_v32 }
  0xbb   : > { %v210_v33 = vpop.xlane.xlu1 %209 }
  0xbc   : > { %v206_v34 = vpop.xlane.xlu0 %205  ;;  %240 = vst.msk [vmem:[%s567_s29 + $0x10] sm:$0xff] %vm237_vm0, %v210_v33 }
  0xbd   : > { %238 = vst.msk [vmem:[%s567_s29] sm:$0xff] %vm237_vm0, %v206_v34 }
  0xbf   : > { %v212_v35 = vpop.xlane.xlu1 %211 }
  0xc0   : > { %v208_v36 = vpop.xlane.xlu0 %207  ;;  %241 = vst.msk [vmem:[%s567_s29 + $0x18] sm:$0xff] %vm237_vm0, %v212_v35 }
  0xc1   : > { %239 = vst.msk [vmem:[%s567_s29 + $0x8] sm:$0xff] %vm237_vm0, %v208_v36 }
  0xc3   : > { %v216_v37 = vpop.xlane.xlu1 %215 }
  0xc4   : > { %v214_v38 = vpop.xlane.xlu0 %213  ;;  %243 = vst.msk [vmem:[%s567_s29 + $0x28] sm:$0xff] %vm237_vm0, %v216_v37 }
  0xc5   : > { %242 = vst.msk [vmem:[%s567_s29 + $0x20] sm:$0xff] %vm237_vm0, %v214_v38 }
  0xc7   : > { %v220_v39 = vpop.xlane.xlu1 %219 }
  0xc8   : > { %v218_v40 = vpop.xlane.xlu0 %217  ;;  %245 = vst.msk [vmem:[%s567_s29 + $0x38] sm:$0xff] %vm237_vm0, %v220_v39 }
  0xc9   : > { %244 = vst.msk [vmem:[%s567_s29 + $0x30] sm:$0xff] %vm237_vm0, %v218_v40 }
  0xcb   : > { %v224_v41 = vpop.xlane.xlu1 %223 }
  0xcc   : > { %v222_v42 = vpop.xlane.xlu0 %221  ;;  %247 = vst.msk [vmem:[%s567_s29 + $0x48] sm:$0xff] %vm237_vm0, %v224_v41 }
  0xcd   : > { %246 = vst.msk [vmem:[%s567_s29 + $0x40] sm:$0xff] %vm237_vm0, %v222_v42 }
  0xcf   : > { %v228_v43 = vpop.xlane.xlu1 %227 }
  0xd0   : > { %v226_v44 = vpop.xlane.xlu0 %225  ;;  %249 = vst.msk [vmem:[%s567_s29 + $0x58] sm:$0xff] %vm237_vm0, %v228_v43 }
  0xd1   : > { %248 = vst.msk [vmem:[%s567_s29 + $0x50] sm:$0xff] %vm237_vm0, %v226_v44 }
  0xd3   : > { %v232_v45 = vpop.xlane.xlu1 %231 }
  0xd4   : > { %v230_v46 = vpop.xlane.xlu0 %229  ;;  %251 = vst.msk [vmem:[%s567_s29 + $0x68] sm:$0xff] %vm237_vm0, %v232_v45 }
  0xd5   : > { %250 = vst.msk [vmem:[%s567_s29 + $0x60] sm:$0xff] %vm237_vm0, %v230_v46 }
  0xd7   : > { %v236_v47 = vpop.xlane.xlu1 %235 }
  0xd8   : > { %v234_v48 = vpop.xlane.xlu0 %233  ;;  %253 = vst.msk [vmem:[%s567_s29 + $0x78] sm:$0xff] %vm237_vm0, %v236_v47 }
  0xd9   : > { %252 = vst.msk [vmem:[%s567_s29 + $0x70] sm:$0xff] %vm237_vm0, %v234_v48 }
  0xda PF: > { %p12_p9 = scmp.ge.s32.totalorder %s479_s14, 4   ;;  %s622_s9 = smov %s431_s10 }
  0xdb   : > { %s623_s10 = smov %s435_s11  ;;  %s624_s11 = smov %s489_s17 }
  0xdc   : > { %s625_s12 = smov %s479_s14  ;;  %14 = sbr.rel (!%p12_p9) target bundleno = 3 (0x3), region = 68 }
  0xe1   :  { %276 = vsyncpa [#allocation3], 1 }
  0xe2   :  { %278 = vsyncpa [#allocation3 + $0x1], 1 }

</bundles_post_ra>
